<compile_context>
chip_gen: v7x
topology: tpu7x:2x2x1
jax: 0.10.0
libtpu: 0.0.40
codegen_flags: <defaults>
</compile_context>

<pallas_src>
import functools

import jax
import jax.numpy as jnp
from jax import lax
from jax.experimental import pallas as pl
from jax.experimental.pallas import tpu as pltpu


_AUG_COLS = 128  # lane-aligned width of the augmented MXU operand


def _gnde_force_kernel(xi_ref, xaug_ref, xT_ref, o_ref, *,
                       r0_sq, k, dim, tile_j, num_chunks):
    """Derivative for one block of TI destination nodes.

    xi_ref  : (TI, D)         positions of the destination nodes i
    xaug_ref: (N, 128)        resident augmented sources [x_hi | x_lo | 1 | 0pad]
    xT_ref  : (D, N)          resident transposed positions (j coords lane-dense)
    o_ref   : (TI, D)         output derivative v_i
    """
    xi = xi_ref[...].astype(jnp.float32)                      # (TI, D)
    ti = xi.shape[0]
    xi_cols = [xi[:, d:d + 1] for d in range(dim)]            # hoisted (TI, 1)

    def body(jc, p_acc):
        j0 = pl.multiple_of(jc * tile_j, tile_j)
        xjT = xT_ref[:, pl.ds(j0, tile_j)].astype(jnp.float32)  # (D, TJ)
        xj_aug = xaug_ref[pl.ds(j0, tile_j), :]                 # (TJ, 128) f32

        # Exact pairwise squared distances (VPU broadcasts only).
        dist2 = jnp.zeros((ti, tile_j), jnp.float32)
        for d in range(dim):
            diff_d = xjT[d:d + 1, :] - xi_cols[d]               # (TI, TJ)
            dist2 = dist2 + diff_d * diff_d

        # Radius-graph edge condition (edgeConditionModule): 0 < dist^2 < r0^2.
        # TODO(synk): like the in-file reference, coincident *distinct* nodes are
        # dropped (distance-based, not index-based, self-exclusion); their force
        # contribution is zero either way.
        maskf = jnp.where((dist2 > 0.0) & (dist2 < r0_sq), 1.0, 0.0)

        # Single MXU contraction folds sum_j m_ij*x_j (hi+lo cols) and
        # deg_i = sum_j m_ij (ones col); accumulated in the loop carry.
        return p_acc + jnp.dot(maskf, xj_aug, preferred_element_type=jnp.float32)

    p = lax.fori_loop(0, num_chunks, body,
                      jnp.zeros((ti, xaug_ref.shape[1]), jnp.float32),
                      unroll=num_chunks <= 8)

    # calc_module.f: v_i = k * (sum_j m_ij x_j - deg_i * x_i); k applied once.
    sum_xj = p[:, :dim] + p[:, dim:2 * dim]                    # hi + lo columns
    deg = p[:, 2 * dim:2 * dim + 1]
    o_ref[...] = (k * (sum_xj - deg * xi)).astype(o_ref.dtype)


def gnde_force(x, *, r0, k, tile_i=None, tile_j=None):
    """Dynamic-graph ODE derivative: v_i = k * sum_{0<||x_j-x_i||<r0} (x_j - x_i)."""
    n, d = x.shape
    assert 2 * d + 1 <= _AUG_COLS, "coordinate dim too large for augmented operand"
    if tile_i is None:
        # prefer >=2 i-blocks so the 1-D "parallel" grid shards across both
        # TensorCores on v7x; blocks of up to 256 rows otherwise.
        tile_i = next((t for t in (256, 128, 64, 32, 16, 8)
                       if n % t == 0 and n // t >= 2), n)
    if tile_j is None:
        # coarse in-kernel j-chunks amortize per-chunk overhead
        tile_j = next((t for t in (1024, 512, 256, 128) if n % t == 0), n)
    assert n % tile_i == 0 and n % tile_j == 0, "N must be divisible by tile sizes"

    xf = x.astype(jnp.float32)                     # keep f32 everywhere (v5e-safe)
    x_hi = xf.astype(jnp.bfloat16).astype(jnp.float32)   # bf16-exact high part
    x_lo = xf - x_hi                                      # f32 residual
    # augmented source matrix [x_hi | x_lo | 1 | zero pad], lane-aligned to 128
    x_aug = jnp.zeros((n, _AUG_COLS), jnp.float32)
    x_aug = x_aug.at[:, :d].set(x_hi).at[:, d:2 * d].set(x_lo).at[:, 2 * d].set(1.0)
    x_t = jnp.transpose(xf)                               # (D, N), glue transpose

    kern = functools.partial(
        _gnde_force_kernel, r0_sq=float(r0) ** 2, k=float(k), dim=d,
        tile_j=tile_j, num_chunks=n // tile_j)

    # TODO(synk): for very large N the two resident operands (x_aug: 512*N bytes,
    # x^T: 4*D*N bytes) should be chunk-DMA'd / pl.Buffered to respect the
    # smaller 64 MiB VMEM on v7x; at the sizes used here they are ~150 KiB.
    return pl.pallas_call(
        kern,
        out_shape=jax.ShapeDtypeStruct((n, d), x.dtype),
        grid_spec=pltpu.PrefetchScalarGridSpec(
            num_scalar_prefetch=0,
            grid=(n // tile_i,),                               # 1-D grid over i only
            in_specs=[
                pl.BlockSpec((tile_i, d), lambda i: (i, 0)),    # x_i block
                pl.BlockSpec((n, _AUG_COLS), lambda i: (0, 0)),  # resident augmented x_j
                pl.BlockSpec((d, n), lambda i: (0, 0)),          # resident x^T
            ],
            out_specs=pl.BlockSpec((tile_i, d), lambda i: (i, 0)),
        ),
        compiler_params=pltpu.CompilerParams(
            dimension_semantics=("parallel",)),
    )(xf, x_aug, x_t)


class DynamicGODEWrapperPallas:
    """JAX/Pallas analogue of dynamicGODEwrapper.

    graph state = dict of node data (ndataInOutModule key 'x', derivative key 'v').
    edgeConditionModule := radius graph with cutoff r0 (strict dist < r0).
    calc_module.f       := harmonic neighbor interaction with stiffness k.
    Edges are recomputed on every call (forceUpdate=True semantics).
    """
    # TODO(synk): the PyTorch edgeRefresh caches the previous x and skips edge
    # recomputation when torch.allclose(x, x_prev); that stateful cache (and
    # torch.cuda.empty_cache) has no clean stateless-JAX equivalent here.

    def __init__(self, r0=0.75, k=1.0):
        self.r0 = float(r0)
        self.k = float(k)
        self.graph = None

    def edge_initialize(self, args=None):
        del args  # edges are implicit (recomputed inside the kernel each call)

    def load_ndata_edge_initialize(self, x, args=None):
        self.graph = {"x": x}
        self.edge_initialize(args)

    def forward(self, t, x, args=None):
        del t, args  # calc_module here is time-independent
        # ndataInOutModule.input: write x into the graph
        self.graph = {"x": x}
        # dynamicGNDEmodule.f: refresh edges + compute derivative (Pallas kernel)
        v = gnde_force(x, r0=self.r0, k=self.k)
        self.graph["v"] = v
        # derivativeInOutModule.output: return ndata['v']
        return v


if __name__ == "__main__":
    key = jax.random.PRNGKey(0)
    N, D = 256, 2                     # small: 256 nodes in 2-D
    x = jax.random.normal(key, (N, D), dtype=jnp.float32)
    t = jnp.float32(0.0)

    model = DynamicGODEWrapperPallas(r0=0.75, k=1.0)
    model.load_ndata_edge_initialize(x)
    v = jax.block_until_ready(model.forward(t, x))

    # pure-JAX reference of the same semantics
    diff = x[None, :, :] - x[:, None, :]          # diff[i, j] = x_j - x_i
    dist2 = jnp.sum(diff * diff, axis=-1)
    mask = (dist2 < model.r0 ** 2) & (dist2 > 0.0)
    v_ref = model.k * jnp.sum(mask[..., None] * diff, axis=1)

    assert v.shape == (N, D) and v.dtype == x.dtype
    # tolerance covers the algebraic regrouping (sum_j m x_j - deg*x_i) and the
    # MXU contraction ordering vs the reference's direct masked sum
    assert jnp.allclose(v, v_ref, atol=1e-3, rtol=1e-3), \
        float(jnp.max(jnp.abs(v - v_ref)))

    print("KERNEL_OK")
</pallas_src>

<mosaic_0001>
module attributes {stable_mosaic.version = 11 : i64} {
  func.func @_gnde_force_kernel(%arg0: i32, %arg1: memref<128x2xf32, #tpu.memory_space<vmem>>, %arg2: memref<256x128xf32, #tpu.memory_space<vmem>>, %arg3: memref<2x256xf32, #tpu.memory_space<vmem>>, %arg4: memref<128x2xf32, #tpu.memory_space<vmem>>) attributes {dimension_semantics = [#tpu.dimension_semantics<parallel>], iteration_bounds = array<i64: 2>, scalar_prefetch = 0 : i64, scratch_operands = 0 : i64, tpu.core_type = #tpu.core_type<tc>, window_params = [{transform_indices = @transform_0, window_bounds = array<i64: 128, 2>}, {pipeline_mode = #tpu.pipeline_mode<synchronous>, transform_indices = @transform_1, window_bounds = array<i64: 256, 128>}, {pipeline_mode = #tpu.pipeline_mode<synchronous>, transform_indices = @transform_2, window_bounds = array<i64: 2, 256>}, {transform_indices = @transform_3, window_bounds = array<i64: 128, 2>}]} {
    %c0 = arith.constant 0 : index
    %c0_0 = arith.constant 0 : index
    %0 = vector.load %arg1[%c0, %c0_0] : memref<128x2xf32, #tpu.memory_space<vmem>>, vector<128x2xf32>
    %1 = vector.extract_strided_slice %0 {offsets = [0, 0], sizes = [128, 1], strides = [1, 1]} : vector<128x2xf32> to vector<128x1xf32>
    %2 = vector.extract_strided_slice %0 {offsets = [0, 1], sizes = [128, 1], strides = [1, 1]} : vector<128x2xf32> to vector<128x1xf32>
    %cst = arith.constant 0.000000e+00 : f32
    %3 = vector.broadcast %cst : f32 to vector<128x128xf32>
    %c0_i32 = arith.constant 0 : i32
    %c256_i32 = arith.constant 256 : i32
    %4 = arith.muli %c0_i32, %c256_i32 : i32
    %5 = tpu.assume_multiple %4, 256 : i32
    %c0_1 = arith.constant 0 : index
    %6 = arith.index_cast %5 : i32 to index
    %7 = vector.load %arg3[%c0_1, %6] : memref<2x256xf32, #tpu.memory_space<vmem>>, vector<2x256xf32>
    %8 = arith.index_cast %5 : i32 to index
    %c0_2 = arith.constant 0 : index
    %9 = vector.load %arg2[%8, %c0_2] : memref<256x128xf32, #tpu.memory_space<vmem>>, vector<256x128xf32>
    %cst_3 = arith.constant 0.000000e+00 : f32
    %10 = vector.broadcast %cst_3 : f32 to vector<128x256xf32>
    %11 = vector.extract_strided_slice %7 {offsets = [0, 0], sizes = [1, 256], strides = [1, 1]} : vector<2x256xf32> to vector<1x256xf32>
    %12 = vector.broadcast %11 : vector<1x256xf32> to vector<128x256xf32>
    %13 = vector.broadcast %1 : vector<128x1xf32> to vector<128x256xf32>
    %14 = arith.subf %12, %13 : vector<128x256xf32>
    %15 = arith.mulf %14, %14 : vector<128x256xf32>
    %16 = arith.addf %10, %15 : vector<128x256xf32>
    %17 = vector.extract_strided_slice %7 {offsets = [1, 0], sizes = [1, 256], strides = [1, 1]} : vector<2x256xf32> to vector<1x256xf32>
    %18 = vector.broadcast %17 : vector<1x256xf32> to vector<128x256xf32>
    %19 = vector.broadcast %2 : vector<128x1xf32> to vector<128x256xf32>
    %20 = arith.subf %18, %19 : vector<128x256xf32>
    %21 = arith.mulf %20, %20 : vector<128x256xf32>
    %22 = arith.addf %16, %21 : vector<128x256xf32>
    %cst_4 = arith.constant 0.000000e+00 : f32
    %23 = vector.broadcast %cst_4 : f32 to vector<128x256xf32>
    %24 = arith.cmpf ogt, %22, %23 : vector<128x256xf32>
    %cst_5 = arith.constant 5.625000e-01 : f32
    %25 = vector.broadcast %cst_5 : f32 to vector<128x256xf32>
    %26 = arith.cmpf olt, %22, %25 : vector<128x256xf32>
    %27 = arith.andi %24, %26 : vector<128x256xi1>
    %cst_6 = arith.constant 1.000000e+00 : f32
    %cst_7 = arith.constant 0.000000e+00 : f32
    %28 = vector.broadcast %cst_6 : f32 to vector<128x256xf32>
    %29 = vector.broadcast %cst_7 : f32 to vector<128x256xf32>
    %30 = arith.select %27, %28, %29 : vector<128x256xi1>, vector<128x256xf32>
    %cst_8 = arith.constant dense<0.000000e+00> : vector<128x128xf32>
    %31 = tpu.matmul %30, %9, %cst_8 {dimension_numbers = #tpu.dot_dimension_numbers<[1], [0], [0], [1], [0, 0, 1, 1], [], []>} : vector<128x256xf32>, vector<256x128xf32>, vector<128x128xf32> -> vector<128x128xf32>
    %32 = arith.addf %3, %31 : vector<128x128xf32>
    %c1_i32 = arith.constant 1 : i32
    %33 = vector.extract_strided_slice %32 {offsets = [0, 0], sizes = [128, 2], strides = [1, 1]} : vector<128x128xf32> to vector<128x2xf32>
    %34 = vector.extract_strided_slice %32 {offsets = [0, 2], sizes = [128, 2], strides = [1, 1]} : vector<128x128xf32> to vector<128x2xf32>
    %35 = arith.addf %33, %34 : vector<128x2xf32>
    %36 = vector.extract_strided_slice %32 {offsets = [0, 4], sizes = [128, 1], strides = [1, 1]} : vector<128x128xf32> to vector<128x1xf32>
    %37 = vector.broadcast %36 : vector<128x1xf32> to vector<128x2xf32>
    %38 = arith.mulf %37, %0 : vector<128x2xf32>
    %39 = arith.subf %35, %38 : vector<128x2xf32>
    %cst_9 = arith.constant 1.000000e+00 : f32
    %40 = vector.broadcast %cst_9 : f32 to vector<128x2xf32>
    %41 = arith.mulf %40, %39 : vector<128x2xf32>
    %c0_10 = arith.constant 0 : index
    %c0_11 = arith.constant 0 : index
    %42 = vector.load %arg4[%c0_10, %c0_11] : memref<128x2xf32, #tpu.memory_space<vmem>>, vector<128x2xf32>
    tpu.vector_store %arg4[%c0_10, %c0_11], %41 {strides = array<i32>} : memref<128x2xf32, #tpu.memory_space<vmem>>, vector<128x2xf32>,
    return
  }
  func.func @transform_0(%arg0: i32) -> (i32, i32) {
    %c0_i32 = arith.constant 0 : i32
    %c0_i32_0 = arith.constant 0 : i32
    return %arg0, %c0_i32 : i32, i32
  }
  func.func @transform_1(%arg0: i32) -> (i32, i32) {
    %c0_i32 = arith.constant 0 : i32
    %c0_i32_0 = arith.constant 0 : i32
    %c0_i32_1 = arith.constant 0 : i32
    return %c0_i32, %c0_i32_0 : i32, i32
  }
  func.func @transform_2(%arg0: i32) -> (i32, i32) {
    %c0_i32 = arith.constant 0 : i32
    %c0_i32_0 = arith.constant 0 : i32
    %c0_i32_1 = arith.constant 0 : i32
    return %c0_i32, %c0_i32_0 : i32, i32
  }
  func.func @transform_3(%arg0: i32) -> (i32, i32) {
    %c0_i32 = arith.constant 0 : i32
    %c0_i32_0 = arith.constant 0 : i32
    return %arg0, %c0_i32 : i32, i32
  }
}

</mosaic_0001>

<bundles_post_ra>
// kernel: tpu_custom_call.1
= control target key start
LH: loop header
LB: loop body
LE: loop exit
PB: predicated region body
PF: predicated region fallthrough
CT: control target
= control target key end

     0   :  { %s1366_s12 = smov 0   ;;  %s1837_s0 = inlined_call_operand.vmem [shape: f32[256,2], index: 0, kind: input, shape index: {}]   ;;  %s1838_s1 = inlined_call_operand.vmem [shape: f32[256,128], index: 1, kind: input, shape index: {}]   ;;  %s1839_s2 = inlined_call_operand.vmem [shape: f32[2,256], index: 2, kind: input, shape index: {}]   ;;  %s1840_s3 = inlined_call_operand.vmem [shape: f32[256,2], index: 3, kind: output, shape index: {}]  }
   0x1 LB: > { %s1118_s13 = sadd.s32 4294967295, %s1339_s12   ;;  %p1122_p0 = scmp.ge.s32.totalorder %s1339_s12, 1  ;;  %s1339_s12 = sphi %s1366_s12, %s13_s12  }
   0x2   : > { %p138_p1 = scmp.lt.s32.totalorder %s1339_s12, 3 }
   0x4   : > { %p139_p2 = pnand %p1122_p0, %p138_p1 }
   0x5   : > { %s1123_s14 = sshll.u32 (!%p139_p2), %s1118_s13, 4  ;;  %v207_v0 = vld [vmem:[%s1838_s1 + $0x80] sm:$0xff] (!%p139_p2)  ;;  %v208_v1 = vld [vmem:[%s1838_s1 + $0x88] sm:$0xff] (!%p139_p2)  ;;  %v1341_v3 = vmov (!%p139_p2), 1   ;;  %v209_v6 = vld [vmem:[%s1838_s1 + $0x90] sm:$0xff] (!%p139_p2)  ;;  %v1342_v36 = vmov (!%p139_p2), 0  }
   0x6   : > { %142 = sbr.rel (%p139_p2) target bundleno = 592 (0x250), region = 32  ;;  %v191_v2 = vld [vmem:[%s1838_s1] sm:$0xff] (!%p139_p2)  ;;  %1304 = vset.pattern.permute.xlu0 (!%p139_p2), %v1341_v3  ;;  %1302 = vset.pattern.permute.xlu1 (!%p139_p2), %v1341_v3  ;;  %p163_p3 = scmp.lt.s32.totalorder (!%p139_p2), %s1123_s14, 31  ;;  %v1241_v4 = vpack.c.bf16 (!%p139_p2), %v208_v1, %v207_v0  ;;  %v192_v5 = vld [vmem:[%s1838_s1 + $0x8] sm:$0xff] (!%p139_p2)  ;;  %v210_v7 = vld [vmem:[%s1838_s1 + $0x98] sm:$0xff] (!%p139_p2) }
   0x7   : > { %v1243_v8 = vpack.c.bf16 (!%p139_p2), %v192_v5, %v191_v2  ;;  %v1245_v9 = vpack.c.bf16 (!%p139_p2), %v210_v7, %v209_v6  ;;  %v193_v10 = vld [vmem:[%s1838_s1 + $0x10] sm:$0xff] (!%p139_p2)  ;;  %v194_v11 = vld [vmem:[%s1838_s1 + $0x18] sm:$0xff] (!%p139_p2)  ;;  %v211_v12 = vld [vmem:[%s1838_s1 + $0xa0] sm:$0xff] (!%p139_p2)  ;;  %v224_v2 = vlaneseq (!%p139_p2)  ;;  %s1345_s13 = smov (!%p139_p2), 126  }
   0x8   : > { %1242 = vmatprep.subr.bf16.mxu0 (!%p139_p2), %v1241_v4  ;;  %1273 = vmatprep.subr.bf16.mxu1 (!%p139_p2), %v1241_v4  ;;  %v212_v13 = vld [vmem:[%s1838_s1 + $0xa8] sm:$0xff] (!%p139_p2)  ;;  %v1247_v14 = vpack.c.bf16 (!%p139_p2), %v194_v11, %v193_v10  ;;  %v195_v16 = vld [vmem:[%s1838_s1 + $0x20] sm:$0xff] (!%p139_p2)  ;;  %v213_v24 = vld [vmem:[%s1838_s1 + $0xb0] sm:$0xff] (!%p139_p2) }
   0x9   : > { %1244 = vmatpush3.bf16.msra.mxu0 (!%p139_p2), %v1243_v8  ;;  %1281 = vmatpush3.bf16.msra.mxu1 (!%p139_p2), %v1243_v8  ;;  %v1249_v15 = vpack.c.bf16 (!%p139_p2), %v212_v13, %v211_v12  ;;  %v196_v17 = vld [vmem:[%s1838_s1 + $0x28] sm:$0xff] (!%p139_p2)  ;;  %v214_v25 = vld [vmem:[%s1838_s1 + $0xb8] sm:$0xff] (!%p139_p2)  ;;  %v197_v27 = vld [vmem:[%s1838_s1 + $0x30] sm:$0xff] (!%p139_p2)  ;;  %v225_v4 = vshrl.u32 (!%p139_p2), %v224_v2, 7 }
   0xa   : > { %1246 = vmatprep.subr.bf16.mxu0 (!%p139_p2), %v1245_v9  ;;  %1274 = vmatprep.subr.bf16.mxu1 (!%p139_p2), %v1245_v9  ;;  %v1251_v22 = vpack.c.bf16 (!%p139_p2), %v196_v17, %v195_v16  ;;  %v1253_v26 = vpack.c.bf16 (!%p139_p2), %v214_v25, %v213_v24  ;;  %v198_v28 = vld [vmem:[%s1838_s1 + $0x38] sm:$0xff] (!%p139_p2)  ;;  %v215_v29 = vld [vmem:[%s1838_s1 + $0xc0] sm:$0xff] (!%p139_p2)  ;;  %v216_v32 = vld [vmem:[%s1838_s1 + $0xc8] sm:$0xff] (!%p139_p2) }
   0xb   : > { %v1255_v31 = vpack.c.bf16 (!%p139_p2), %v198_v28, %v197_v27  ;;  %v1257_v33 = vpack.c.bf16 (!%p139_p2), %v216_v32, %v215_v29  ;;  %v199_v34 = vld [vmem:[%s1838_s1 + $0x40] sm:$0xff] (!%p139_p2)  ;;  %v200_v35 = vld [vmem:[%s1838_s1 + $0x48] sm:$0xff] (!%p139_p2)  ;;  %v217_v37 = vld [vmem:[%s1838_s1 + $0xd0] sm:$0xff] (!%p139_p2)  ;;  %v420_v5 = vsub.s32 (!%p139_p2), 1, %v225_v4  ;;  %v424_v6 = vsub.s32 (!%p139_p2), 3, %v225_v4 }
   0xc   : > { %v218_v38 = vld [vmem:[%s1838_s1 + $0xd8] sm:$0xff] (!%p139_p2)  ;;  %v1259_v39 = vpack.c.bf16 (!%p139_p2), %v200_v35, %v199_v34  ;;  %v201_v41 = vld [vmem:[%s1838_s1 + $0x50] sm:$0xff] (!%p139_p2)  ;;  %v219_v43 = vld [vmem:[%s1838_s1 + $0xe0] sm:$0xff] (!%p139_p2)  ;;  %v226_v12 = vsub.s32 (!%p139_p2), 0, %v225_v4  ;;  %v230_v13 = vsub.s32 (!%p139_p2), 2, %v225_v4 }
   0xd   : > { %s1844_s14 = smov (!%p163_p3, %s1123_s14), 31  ;;  %1248 = vmatpush3.bf16.msra.mxu0 %v1247_v14  ;;  %1282 = vmatpush3.bf16.msra.mxu1 %v1247_v14  ;;  %v1261_v40 = vpack.c.bf16 %v218_v38, %v217_v37  ;;  %v202_v42 = vld [vmem:[%s1838_s1 + $0x58] sm:$0xff]  ;;  %v220_v44 = vld [vmem:[%s1838_s1 + $0xe8] sm:$0xff]  ;;  %v203_v47 = vld [vmem:[%s1838_s1 + $0x60] sm:$0xff] }
   0xe   : > { %s1124_s8 = sshll.u32 %s1844_s14, 3  ;;  %1250 = vmatprep.subr.bf16.mxu0 %v1249_v15  ;;  %1275 = vmatprep.subr.bf16.mxu1 %v1249_v15  ;;  %v1263_v45 = vpack.c.bf16 %v202_v42, %v201_v41  ;;  %v1265_v46 = vpack.c.bf16 %v220_v44, %v219_v43  ;;  %v204_v48 = vld [vmem:[%s1838_s1 + $0x68] sm:$0xff]  ;;  %v221_v50 = vld [vmem:[%s1838_s1 + $0xf0] sm:$0xff]  ;;  %v222_v51 = vld [vmem:[%s1838_s1 + $0xf8] sm:$0xff] }
   0xf   : > { %s1414_s11 = scalar_lea.vmem %s1837_s0, %s1124_s8  ;;  %v1267_v52 = vpack.c.bf16 %v204_v48, %v203_v47  ;;  %v1269_v53 = vpack.c.bf16 %v222_v51, %v221_v50  ;;  %v205_v54 = vld [vmem:[%s1838_s1 + $0x70] sm:$0xff]  ;;  %v206_v55 = vld [vmem:[%s1838_s1 + $0x78] sm:$0xff]  ;;  %v190_v7 = vld [vmem:[%s1839_s2] sm:$0xf]  ;;  %s1770_s17 = scalar_lea.vmem %s1840_s3, %s1124_s8 }
  0x10   : > { %v1423_v18 = vld [vmem:[%s1414_s11 + $0x8] sm:$0xff]  ;;  %v174_v19 = vld [vmem:[%s1414_s11] sm:$0xff]  ;;  %v1428_v20 = vld [vmem:[%s1414_s11 + $0x18] sm:$0xff]  ;;  %v1271_v57 = vpack.c.bf16 %v206_v55, %v205_v54  ;;  %v421_v10 = vrot.slane %v190_v7, %v420_v5  ;;  %v425_v11 = vrot.slane %v190_v7, %v424_v6  ;;  %v227_v17 = vrot.slane %v190_v7, %v226_v12 }
  0x11   : > { %441 = vperm.xlu0 %1304, %v1423_v18   ;;  %437 = vperm.xlu1 %1302, %v174_v19   ;;  %v182_v21 = vld [vmem:[%s1414_s11 + $0x40] sm:$0xff]  ;;  %v1433_v23 = vld [vmem:[%s1414_s11 + $0x28] sm:$0xff]  ;;  %v176_v49 = vld [vmem:[%s1414_s11 + $0x10] sm:$0xff] }
  0x12   : > { %1252 = vmatpush3.bf16.msra.mxu0 %v1251_v22  ;;  %1283 = vmatpush3.bf16.msra.mxu1 %v1251_v22  ;;  %v183_v30 = vld [vmem:[%s1414_s11 + $0x48] sm:$0xff]  ;;  %v1504_v56 = vld [vmem:[%s1414_s11 + $0x50] sm:$0xff]  ;;  %v186_v58 = vld [vmem:[%s1414_s11 + $0x60] sm:$0xff]  ;;  %v1549_v16 = vrot.slane %v421_v10, %v420_v5  ;;  %v1557_v22 = vrot.slane %v227_v17, %v226_v12 }
  0x13   : > { %1254 = vmatprep.subr.bf16.mxu0 %v1253_v26  ;;  %1276 = vmatprep.subr.bf16.mxu1 %v1253_v26  ;;  %v1512_v59 = vld [vmem:[%s1414_s11 + $0x58] sm:$0xff]  ;;  %v188_v60 = vld [vmem:[%s1414_s11 + $0x70] sm:$0xff]  ;;  %v1521_v61 = vld [vmem:[%s1414_s11 + $0x20] sm:$0xff] }
  0x14   : > { %v181_v62 = vld [vmem:[%s1414_s11 + $0x38] sm:$0xff]  ;;  %v1530_v63 = vld [vmem:[%s1414_s11 + $0x68] sm:$0xff]  ;;  %v1537_v0 = vld [vmem:[%s1414_s11 + $0x30] sm:$0xff] }
  0x15   : > { %449 = vperm.xlu0 %1304, %v1428_v20   ;;  %469 = vperm.xlu1 %1302, %v182_v21   ;;  %v189_v1 = vld [vmem:[%s1414_s11 + $0x78] sm:$0xff] }
  0x16   : > { %1256 = vmatpush3.bf16.msra.mxu0 %v1255_v31  ;;  %1284 = vmatpush3.bf16.msra.mxu1 %v1255_v31 }
  0x17   : > { %1258 = vmatprep.subr.bf16.mxu0 %v1257_v33  ;;  %1277 = vmatprep.subr.bf16.mxu1 %v1257_v33 }
  0x19   : > { %457 = vperm.xlu0 %1304, %v1433_v23   ;;  %1303 = vset.pattern.permute.xlu1 %v1342_v36 }
  0x1a   : > { %289 = vperm.xlu1 %1303, %v183_v30   ;;  %1260 = vmatpush3.bf16.msra.mxu0 %v1259_v39 }
  0x1b   : > { %1262 = vmatprep.subr.bf16.mxu0 %v1261_v40  ;;  %1285 = vmatpush3.bf16.msra.mxu1 %v1259_v39 }
  0x1c   : > { %1278 = vmatprep.subr.bf16.mxu1 %v1261_v40 }
  0x1d   : > { %1313 = vset.pattern.permute.xlu0 %v1342_v36 }
  0x1e   : > { %244 = vperm.xlu0 %1313, %v174_v19   ;;  %1305 = vset.pattern.permute.xlu1 %v1341_v3 }
  0x1f   : > { %473 = vperm.xlu1 %1305, %v183_v30   ;;  %1264 = vmatpush3.bf16.msra.mxu0 %v1263_v45 }
  0x20   : > { %1266 = vmatprep.subr.bf16.mxu0 %v1265_v46  ;;  %1286 = vmatpush3.bf16.msra.mxu1 %v1263_v45 }
  0x21   : > { %1279 = vmatprep.subr.bf16.mxu1 %v1265_v46 }
  0x22   : > { %284 = vperm.xlu0 %1313, %v182_v21  }
  0x23   : > { %1306 = vset.pattern.permute.xlu1 %v1342_v36  ;;  %1268 = vmatpush3.bf16.msra.mxu0 %v1267_v52 }
  0x24   : > { %254 = vperm.xlu1 %1306, %v176_v49   ;;  %1270 = vmatprep.subr.bf16.mxu0 %v1269_v53 }
  0x25   : > { %1287 = vmatpush3.bf16.msra.mxu1 %v1267_v52 }
  0x26   : > { %249 = vperm.xlu0 %1313, %v1423_v18   ;;  %1280 = vmatprep.subr.bf16.mxu1 %v1269_v53  ;;  %v231_v18 = vrot.slane %v190_v7, %v230_v13  ;;  %v1343_v13 = vmov 1.0  }
  0x27   : > { %1272 = vmatpush3.bf16.msra.mxu0 %v1271_v57 }
  0x28   : > { %1307 = vset.pattern.permute.xlu1 %v1341_v3 }
  0x29   : > { %445 = vperm.xlu1 %1307, %v176_v49   ;;  %1288 = vmatpush3.bf16.msra.mxu1 %v1271_v57 }
  0x2a   : > { %294 = vperm.xlu0 %1313, %v1504_v56  }
  0x2d   : > { %477 = vperm.xlu1 %1307, %v1504_v56  }
  0x2e   : > { %259 = vperm.xlu0 %1313, %v1428_v20  }
  0x31   : > { %1308 = vset.pattern.permute.xlu1 %v1342_v36 }
  0x32   : > { %304 = vperm.xlu0 %1313, %v186_v58   ;;  %299 = vperm.xlu1 %1308, %v1512_v59  }
  0x36   : > { %269 = vperm.xlu0 %1313, %v1433_v23   ;;  %1309 = vset.pattern.permute.xlu1 %v1341_v3  ;;  %v1559_v23 = vrot.slane %v231_v18, %v226_v12 }
  0x37   : > { %481 = vperm.xlu1 %1309, %v1512_v59  }
  0x3a   : > { %314 = vperm.xlu0 %1313, %v188_v60  }
  0x3b   : > { %1310 = vset.pattern.permute.xlu1 %v1342_v36 }
  0x3c   : > { %264 = vperm.xlu1 %1310, %v1521_v61  }
  0x3e   : > { %279 = vperm.xlu0 %1313, %v181_v62  }
  0x40   : > { %1311 = vset.pattern.permute.xlu1 %v1341_v3 }
  0x41   : > { %453 = vperm.xlu1 %1311, %v1521_v61  }
  0x42   : > { %1318 = vset.pattern.permute.xlu0 %v1341_v3 }
  0x43   : > { %465 = vperm.xlu0 %1318, %v181_v62  }
  0x45   : > { %485 = vperm.xlu1 %1311, %v186_v58  }
  0x49   : > { %1312 = vset.pattern.permute.xlu1 %v1342_v36 }
  0x4a   : > { %309 = vperm.xlu1 %1312, %v1530_v63  }
  0x4e   : > { %1314 = vset.pattern.permute.xlu1 %v1341_v3 }
  0x4f   : > { %489 = vperm.xlu1 %1314, %v1530_v63  }
  0x53   : > { %1315 = vset.pattern.permute.xlu1 %v1342_v36 }
  0x54   : > { %274 = vperm.xlu1 %1315, %v1537_v0  }
  0x58   : > { %1316 = vset.pattern.permute.xlu1 %v1341_v3 }
  0x59   : > { %461 = vperm.xlu1 %1316, %v1537_v0  }
  0x5d   : > { %493 = vperm.xlu1 %1316, %v188_v60  }
  0x61   : > { %1317 = vset.pattern.permute.xlu1 %v1342_v36 }
  0x62   : > { %319 = vperm.xlu1 %1317, %v189_v1  }
  0x66   : > { %1319 = vset.pattern.permute.xlu1 %v1341_v3  ;;  %v1551_v3 = vrot.slane %v425_v11, %v420_v5 }
  0x67   : > { %497 = vperm.xlu1 %1319, %v189_v1  }
  0x90   : > { %v438_v8 = vpop.permute.xlu1 %437  ;;  %v442_v9 = vpop.permute.xlu0 %441 }
  0x91   : > { %v500_v20 = vsub.f32 %v1549_v16, %v438_v8  ;;  %v501_v21 = vsub.f32 %v1551_v3, %v438_v8  ;;  %v502_v25 = vsub.f32 %v1549_v16, %v442_v9  ;;  %v503_v26 = vsub.f32 %v1551_v3, %v442_v9 }
  0x93   : > { %v532_v29 = vmul.f32 %v500_v20, %v500_v20  ;;  %v533_v30 = vmul.f32 %v501_v21, %v501_v21  ;;  %v534_v34 = vmul.f32 %v502_v25, %v502_v25  ;;  %v1567_v35 = vmul.f32 %v503_v26, %v503_v26 }
  0x94   : > { %v470_v14 = vpop.permute.xlu1 %469  ;;  %v450_v15 = vpop.permute.xlu0 %449 }
  0x95   : > { %v516_v27 = vsub.f32 %v1549_v16, %v470_v14  ;;  %v517_v28 = vsub.f32 %v1551_v3, %v470_v14  ;;  %v506_v39 = vsub.f32 %v1549_v16, %v450_v15  ;;  %v507_v40 = vsub.f32 %v1551_v3, %v450_v15 }
  0x97   : > { %v548_v43 = vmul.f32 %v516_v27, %v516_v27  ;;  %v549_v44 = vmul.f32 %v517_v28, %v517_v28  ;;  %v1577_v57 = vmul.f32 %v506_v39, %v506_v39  ;;  %v1579_v58 = vmul.f32 %v507_v40, %v507_v40 }
  0x98   : > { %v1553_v19 = vpop.permute.xlu0 %457 }
  0x99   : > { %v290_v24 = vpop.permute.xlu1 %289 }
  0x9a   : > { %v340_v31 = vsub.f32 %v1557_v22, %v290_v24  ;;  %v341_v32 = vsub.f32 %v1559_v23, %v290_v24 }
  0x9c   : > { %v372_v47 = vmul.f32 %v340_v31, %v340_v31  ;;  %v373_v48 = vmul.f32 %v341_v32, %v341_v32 }
  0x9d   : > { %v245_v33 = vpop.permute.xlu0 %244 }
  0x9e   : > { %v322_v36 = vsub.f32 %v1557_v22, %v245_v33  ;;  %v323_v37 = vsub.f32 %v1559_v23, %v245_v33  ;;  %v474_v38 = vpop.permute.xlu1 %473 }
  0x9f   : > { %v518_v41 = vsub.f32 %v1549_v16, %v474_v38  ;;  %v519_v42 = vsub.f32 %v1551_v3, %v474_v38 }
  0xa0   : > { %v354_v45 = vmul.f32 %v322_v36, %v322_v36  ;;  %v355_v46 = vmul.f32 %v323_v37, %v323_v37 }
  0xa1   : > { %v550_v49 = vmul.f32 %v518_v41, %v518_v41  ;;  %v551_v50 = vmul.f32 %v519_v42, %v519_v42  ;;  %v285_v51 = vpop.permute.xlu0 %284 }
  0xa2   : > { %v564_v52 = vadd.f32 %v532_v29, %v354_v45  ;;  %v338_v53 = vsub.f32 %v1557_v22, %v285_v51  ;;  %v339_v54 = vsub.f32 %v1559_v23, %v285_v51  ;;  %v565_v55 = vadd.f32 %v533_v30, %v355_v46 }
  0xa3   : > { %v582_v60 = vadd.f32 %v550_v49, %v372_v47  ;;  %v583_v62 = vadd.f32 %v551_v50, %v373_v48  ;;  %v255_v1 = vpop.permute.xlu1 %254 }
  0xa4   : > { %v370_v2 = vmul.f32 %v338_v53, %v338_v53  ;;  %v371_v4 = vmul.f32 %v339_v54, %v339_v54  ;;  %v326_v5 = vsub.f32 %v1557_v22, %v255_v1  ;;  %v327_v6 = vsub.f32 %v1559_v23, %v255_v1 }
  0xa5   : > { %v250_v7 = vpop.permute.xlu0 %249  ;;  %vm597_vm0 = vcmp.gt.f32.partialorder %v565_v55, 0.0  ;;  %vm629_vm1 = vcmp.lt.f32.partialorder %v565_v55, 0.5625  ;;  %vm596_vm2 = vcmp.gt.f32.partialorder %v564_v52, 0.0  ;;  %vm628_vm3 = vcmp.lt.f32.partialorder %v564_v52, 0.5625 }
  0xa6   : > { %v580_v8 = vadd.f32 %v548_v43, %v370_v2  ;;  %v358_v9 = vmul.f32 %v326_v5, %v326_v5  ;;  %v359_v10 = vmul.f32 %v327_v6, %v327_v6  ;;  %v324_v11 = vsub.f32 %v1557_v22, %v250_v7  ;;  %vm661_vm4 = vmand %vm597_vm0, %vm629_vm1 }
  0xa7   : > { %v325_v12 = vsub.f32 %v1559_v23, %v250_v7  ;;  %1127 = vmatprep.mubr.msk.f32.mxu0 %vm661_vm4, %v1343_v13  ;;  %vm660_vm5 = vmand %vm596_vm2, %vm628_vm3  ;;  %v581_v14 = vadd.f32 %v549_v44, %v371_v4  ;;  %vm615_vm6 = vcmp.gt.f32.partialorder %v583_v62, 0.0  ;;  %vm647_vm7 = vcmp.lt.f32.partialorder %v583_v62, 0.5625 }
  0xa8   : > { %v356_v15 = vmul.f32 %v324_v11, %v324_v11  ;;  %1128 = vmatmul.mubr.msk.f32.vlgmr.msra.gmra.mrb[0].mxu0 %vm660_vm5, %v1343_v13  ;;  %v446_v17 = vpop.permute.xlu1 %445  ;;  %vm612_vm8 = vcmp.gt.f32.partialorder %v580_v8, 0.0  ;;  %vm644_vm9 = vcmp.lt.f32.partialorder %v580_v8, 0.5625  ;;  %vm614_vm10 = vcmp.gt.f32.partialorder %v582_v60, 0.0  ;;  %vm679_vm0 = vmand %vm615_vm6, %vm647_vm7 }
  0xa9   : > { %v357_v18 = vmul.f32 %v325_v12, %v325_v12  ;;  %v504_v20 = vsub.f32 %v1549_v16, %v446_v17  ;;  %v505_v21 = vsub.f32 %v1551_v3, %v446_v17  ;;  %v295_v24 = vpop.permute.xlu0 %294  ;;  %vm613_vm11 = vcmp.gt.f32.partialorder %v581_v14, 0.0  ;;  %vm676_vm13 = vmand %vm612_vm8, %vm644_vm9 }
  0xaa   : > { %v566_v25 = vadd.f32 %v534_v34, %v356_v15  ;;  %v342_v26 = vsub.f32 %v1557_v22, %v295_v24  ;;  %v343_v27 = vsub.f32 %v1559_v23, %v295_v24  ;;  %vm645_vm12 = vcmp.lt.f32.partialorder %v581_v14, 0.5625 }
  0xab   : > { %v567_v28 = vadd.f32 %v1567_v35, %v357_v18  ;;  %v536_v29 = vmul.f32 %v504_v20, %v504_v20  ;;  %v537_v30 = vmul.f32 %v505_v21, %v505_v21  ;;  %vm677_vm14 = vmand %vm613_vm11, %vm645_vm12  ;;  %vm646_vm15 = vcmp.lt.f32.partialorder %v582_v60, 0.5625 }
  0xac   : > { %v374_v31 = vmul.f32 %v342_v26, %v342_v26  ;;  %v375_v32 = vmul.f32 %v343_v27, %v343_v27  ;;  %1143 = vmatprep.mubr.msk.f32.mxu1 %vm677_vm14, %v1343_v13  ;;  %v478_v33 = vpop.permute.xlu1 %477  ;;  %vm598_vm1 = vcmp.gt.f32.partialorder %v566_v25, 0.0  ;;  %vm630_vm2 = vcmp.lt.f32.partialorder %v566_v25, 0.5625  ;;  %vm1599_vm3 = vmand %vm614_vm10, %vm646_vm15 }
  0xad   : > { %v568_v34 = vadd.f32 %v536_v29, %v358_v9  ;;  %v569_v36 = vadd.f32 %v537_v30, %v359_v10  ;;  %1144 = vmatmul.mubr.msk.f32.vlgmr.msra.gmra.mrb[0].mxu1 %vm676_vm13, %v1343_v13  ;;  %v520_v35 = vsub.f32 %v1549_v16, %v478_v33  ;;  %v521_v37 = vsub.f32 %v1551_v3, %v478_v33  ;;  %v260_v38 = vpop.permute.xlu0 %259  ;;  %vm662_vm6 = vmand %vm598_vm1, %vm630_vm2 }
  0xae   : > { %1145 = vmatprep.mubr.msk.f32.mxu1 %vm679_vm0, %v1343_v13  ;;  %v328_v40 = vsub.f32 %v1557_v22, %v260_v38  ;;  %v329_v41 = vsub.f32 %v1559_v23, %v260_v38  ;;  %vm599_vm4 = vcmp.gt.f32.partialorder %v567_v28, 0.0  ;;  %vm631_vm5 = vcmp.lt.f32.partialorder %v567_v28, 0.5625 }
  0xaf   : > { %v552_v42 = vmul.f32 %v520_v35, %v520_v35  ;;  %v553_v43 = vmul.f32 %v521_v37, %v521_v37  ;;  %vm663_vm7 = vmand %vm599_vm4, %vm631_vm5  ;;  %vm601_vm8 = vcmp.gt.f32.partialorder %v569_v36, 0.0  ;;  %vm633_vm9 = vcmp.lt.f32.partialorder %v569_v36, 0.5625 }
  0xb0   : > { %v360_v44 = vmul.f32 %v328_v40, %v328_v40  ;;  %v361_v45 = vmul.f32 %v329_v41, %v329_v41  ;;  %1129 = vmatprep.mubr.msk.f32.mxu0 %vm663_vm7, %v1343_v13  ;;  %vm665_vm10 = vmand %vm601_vm8, %vm633_vm9  ;;  %vm600_vm11 = vcmp.gt.f32.partialorder %v568_v34, 0.0  ;;  %vm632_vm12 = vcmp.lt.f32.partialorder %v568_v34, 0.5625 }
  0xb1   : > { %v584_v46 = vadd.f32 %v552_v42, %v374_v31  ;;  %v585_v47 = vadd.f32 %v553_v43, %v375_v32  ;;  %1130 = vmatmul.mubr.msk.f32.gmra.mrb[2].mxu0 %vm662_vm6, %v1343_v13  ;;  %1146 = vmatmul.mubr.msk.f32.gmra.mrb[2].mxu1 %vm1599_vm3, %v1343_v13  ;;  %v305_v48 = vpop.permute.xlu0 %304  ;;  %v300_v49 = vpop.permute.xlu1 %299  ;;  %vm664_vm13 = vmand %vm600_vm11, %vm632_vm12  ;;  %v511_v8 = vsub.f32 %v1551_v3, %v1553_v19 }
  0xb2   : > { %v570_v50 = vadd.f32 %v1577_v57, %v360_v44  ;;  %v571_v51 = vadd.f32 %v1579_v58, %v361_v45  ;;  %1131 = vmatprep.mubr.msk.f32.mxu0 %vm665_vm10, %v1343_v13  ;;  %v344_v52 = vsub.f32 %v1557_v22, %v300_v49  ;;  %v345_v53 = vsub.f32 %v1559_v23, %v300_v49 }
  0xb3   : > { %vm617_vm14 = vcmp.gt.f32.partialorder %v585_v47, 0.0  ;;  %vm649_vm15 = vcmp.lt.f32.partialorder %v585_v47, 0.5625  ;;  %vm616_vm4 = vcmp.gt.f32.partialorder %v584_v46, 0.0  ;;  %vm648_vm5 = vcmp.lt.f32.partialorder %v584_v46, 0.5625 }
  0xb4   : > { %vm681_vm0 = vmand %vm617_vm14, %vm649_vm15  ;;  %vm603_vm1 = vcmp.gt.f32.partialorder %v571_v51, 0.0  ;;  %vm635_vm2 = vcmp.lt.f32.partialorder %v571_v51, 0.5625  ;;  %vm602_vm7 = vcmp.gt.f32.partialorder %v570_v50, 0.0  ;;  %vm634_vm8 = vcmp.lt.f32.partialorder %v570_v50, 0.5625 }
  0xb5   : > { %1132 = vmatmul.mubr.msk.f32.gmra.mrb[4].mxu0 %vm664_vm13, %v1343_v13  ;;  %1147 = vmatprep.mubr.msk.f32.mxu1 %vm681_vm0, %v1343_v13  ;;  %vm667_vm3 = vmand %vm603_vm1, %vm635_vm2  ;;  %v270_v55 = vpop.permute.xlu0 %269  ;;  %v376_v60 = vmul.f32 %v344_v52, %v344_v52  ;;  %v377_v62 = vmul.f32 %v345_v53, %v345_v53  ;;  %v510_v10 = vsub.f32 %v1549_v16, %v1553_v19 }
  0xb6   : > { %1133 = vmatprep.mubr.msk.f32.mxu0 %vm667_vm3, %v1343_v13  ;;  %vm680_vm6 = vmand %vm616_vm4, %vm648_vm5  ;;  %v482_v54 = vpop.permute.xlu1 %481  ;;  %v333_v4 = vsub.f32 %v1559_v23, %v270_v55  ;;  %v332_v9 = vsub.f32 %v1557_v22, %v270_v55  ;;  %v543_v15 = vmul.f32 %v511_v8, %v511_v8  ;;  %v346_v19 = vsub.f32 %v1557_v22, %v305_v48 }
  0xb7   : > { %1148 = vmatmul.mubr.msk.f32.gmra.mrb[4].mxu1 %vm680_vm6, %v1343_v13  ;;  %v522_v57 = vsub.f32 %v1549_v16, %v482_v54  ;;  %v523_v58 = vsub.f32 %v1551_v3, %v482_v54  ;;  %vm666_vm9 = vmand %vm602_vm7, %vm634_vm8  ;;  %v542_v24 = vmul.f32 %v510_v10, %v510_v10  ;;  %v347_v25 = vsub.f32 %v1559_v23, %v305_v48 }
  0xb8   : > { %v365_v11 = vmul.f32 %v333_v4, %v333_v4  ;;  %v364_v18 = vmul.f32 %v332_v9, %v332_v9  ;;  %v378_v35 = vmul.f32 %v346_v19, %v346_v19 }
  0xb9   : > { %v554_v1 = vmul.f32 %v522_v57, %v522_v57  ;;  %v555_v2 = vmul.f32 %v523_v58, %v523_v58  ;;  %1134 = vmatmul.mubr.msk.f32.gmra.mrb[6].mxu0 %vm666_vm9, %v1343_v13  ;;  %v1637_v27 = vpop.permute.xlu0 %314  ;;  %v379_v37 = vmul.f32 %v347_v25, %v347_v25 }
  0xba   : > { %v575_v26 = vadd.f32 %v543_v15, %v365_v11  ;;  %v574_v33 = vadd.f32 %v542_v24, %v364_v18  ;;  %v351_v15 = vsub.f32 %v1559_v23, %v1637_v27 }
  0xbb   : > { %v586_v5 = vadd.f32 %v554_v1, %v376_v60  ;;  %v587_v6 = vadd.f32 %v555_v2, %v377_v62  ;;  %v265_v7 = vpop.permute.xlu1 %264 }
  0xbc   : > { %v330_v12 = vsub.f32 %v1557_v22, %v265_v7  ;;  %v331_v14 = vsub.f32 %v1559_v23, %v265_v7  ;;  %vm607_vm2 = vcmp.gt.f32.partialorder %v575_v26, 0.0  ;;  %vm639_vm3 = vcmp.lt.f32.partialorder %v575_v26, 0.5625 }
  0xbd   : > { %vm619_vm10 = vcmp.gt.f32.partialorder %v587_v6, 0.0  ;;  %vm651_vm11 = vcmp.lt.f32.partialorder %v587_v6, 0.5625  ;;  %vm618_vm12 = vcmp.gt.f32.partialorder %v586_v5, 0.0  ;;  %vm650_vm13 = vcmp.lt.f32.partialorder %v586_v5, 0.5625  ;;  %v280_v42 = vpop.permute.xlu0 %279 }
  0xbe   : > { %vm683_vm14 = vmand %vm619_vm10, %vm651_vm11  ;;  %v362_v28 = vmul.f32 %v330_v12, %v330_v12  ;;  %v363_v29 = vmul.f32 %v331_v14, %v331_v14  ;;  %vm606_vm8 = vcmp.gt.f32.partialorder %v574_v33, 0.0  ;;  %vm638_vm9 = vcmp.lt.f32.partialorder %v574_v33, 0.5625 }
  0xbf   : > { %1149 = vmatprep.mubr.msk.f32.mxu1 %vm683_vm14, %v1343_v13  ;;  %vm682_vm15 = vmand %vm618_vm12, %vm650_vm13  ;;  %v337_v1 = vsub.f32 %v1559_v23, %v280_v42  ;;  %v336_v4 = vsub.f32 %v1557_v22, %v280_v42  ;;  %v350_v14 = vsub.f32 %v1557_v22, %v1637_v27  ;;  %v383_v33 = vmul.f32 %v351_v15, %v351_v15 }
  0xc0   : > { %1150 = vmatmul.mubr.msk.f32.gmra.mrb[6].mxu1 %vm682_vm15, %v1343_v13  ;;  %v454_v17 = vpop.permute.xlu1 %453  ;;  %vm671_vm10 = vmand %vm607_vm2, %vm639_vm3 }
  0xc1   : > { %v508_v20 = vsub.f32 %v1549_v16, %v454_v17  ;;  %v509_v21 = vsub.f32 %v1551_v3, %v454_v17  ;;  %vm670_vm13 = vmand %vm606_vm8, %vm638_vm9  ;;  %v369_v8 = vmul.f32 %v337_v1, %v337_v1  ;;  %v368_v17 = vmul.f32 %v336_v4, %v336_v4 }
  0xc2   : > { %v466_v49 = vpop.permute.xlu0 %465 }
  0xc3   : > { %v540_v30 = vmul.f32 %v508_v20, %v508_v20  ;;  %v541_v31 = vmul.f32 %v509_v21, %v509_v21  ;;  %v515_v57 = vsub.f32 %v1551_v3, %v466_v49  ;;  %v514_v2 = vsub.f32 %v1549_v16, %v466_v49 }
  0xc4   : > { %v486_v32 = vpop.permute.xlu1 %485 }
  0xc5   : > { %v572_v34 = vadd.f32 %v540_v30, %v362_v28  ;;  %v573_v36 = vadd.f32 %v541_v31, %v363_v29  ;;  %v524_v38 = vsub.f32 %v1549_v16, %v486_v32  ;;  %v525_v39 = vsub.f32 %v1551_v3, %v486_v32 }
  0xc6   : > { %v547_v5 = vmul.f32 %v515_v57, %v515_v57  ;;  %v546_v9 = vmul.f32 %v514_v2, %v514_v2  ;;  %v382_v32 = vmul.f32 %v350_v14, %v350_v14 }
  0xc7   : > { %vm605_vm0 = vcmp.gt.f32.partialorder %v573_v36, 0.0  ;;  %vm637_vm1 = vcmp.lt.f32.partialorder %v573_v36, 0.5625  ;;  %v556_v40 = vmul.f32 %v524_v38, %v524_v38  ;;  %v557_v41 = vmul.f32 %v525_v39, %v525_v39 }
  0xc8   : > { %vm669_vm4 = vmand %vm605_vm0, %vm637_vm1  ;;  %vm604_vm5 = vcmp.gt.f32.partialorder %v572_v34, 0.0  ;;  %vm636_vm6 = vcmp.lt.f32.partialorder %v572_v34, 0.5625  ;;  %v579_v18 = vadd.f32 %v547_v5, %v369_v8  ;;  %v578_v25 = vadd.f32 %v546_v9, %v368_v17 }
  0xc9   : > { %1135 = vmatprep.mubr.msk.f32.mxu0 %vm669_vm4, %v1343_v13  ;;  %v310_v43 = vpop.permute.xlu1 %309  ;;  %vm668_vm7 = vmand %vm604_vm5, %vm636_vm6  ;;  %v588_v44 = vadd.f32 %v556_v40, %v378_v35  ;;  %v589_v45 = vadd.f32 %v557_v41, %v379_v37 }
  0xca   : > { %1136 = vmatmul.mubr.msk.f32.gmra.mrb[8].mxu0 %vm668_vm7, %v1343_v13  ;;  %v348_v46 = vsub.f32 %v1557_v22, %v310_v43  ;;  %v349_v47 = vsub.f32 %v1559_v23, %v310_v43  ;;  %vm611_vm8 = vcmp.gt.f32.partialorder %v579_v18, 0.0  ;;  %vm643_vm9 = vcmp.lt.f32.partialorder %v579_v18, 0.5625 }
  0xcb   : > { %1137 = vmatprep.mubr.msk.f32.mxu0 %vm671_vm10, %v1343_v13  ;;  %vm621_vm11 = vcmp.gt.f32.partialorder %v589_v45, 0.0  ;;  %vm653_vm12 = vcmp.lt.f32.partialorder %v589_v45, 0.5625  ;;  %vm620_vm15 = vcmp.gt.f32.partialorder %v588_v44, 0.0  ;;  %vm652_vm0 = vcmp.lt.f32.partialorder %v588_v44, 0.5625 }
  0xcc   : > { %vm685_vm14 = vmand %vm621_vm11, %vm653_vm12  ;;  %v380_v52 = vmul.f32 %v348_v46, %v348_v46  ;;  %v381_v53 = vmul.f32 %v349_v47, %v349_v47 }
  0xcd   : > { %1151 = vmatprep.mubr.msk.f32.mxu1 %vm685_vm14, %v1343_v13  ;;  %vm684_vm1 = vmand %vm620_vm15, %vm652_vm0  ;;  %vm610_vm15 = vcmp.gt.f32.partialorder %v578_v25, 0.0  ;;  %vm642_vm0 = vcmp.lt.f32.partialorder %v578_v25, 0.5625 }
  0xce   : > { %1138 = vmatmul.mubr.msk.f32.gmra.mrb[10].mxu0 %vm670_vm13, %v1343_v13  ;;  %v490_v48 = vpop.permute.xlu1 %489  ;;  %1152 = vmatmul.mubr.msk.f32.gmra.mrb[8].mxu1 %vm684_vm1, %v1343_v13 }
  0xcf   : > { %v526_v50 = vsub.f32 %v1549_v16, %v490_v48  ;;  %v527_v51 = vsub.f32 %v1551_v3, %v490_v48 }
  0xd1   : > { %v558_v54 = vmul.f32 %v526_v50, %v526_v50  ;;  %v559_v55 = vmul.f32 %v527_v51, %v527_v51 }
  0xd3   : > { %v590_v58 = vadd.f32 %v558_v54, %v380_v52  ;;  %v591_v60 = vadd.f32 %v559_v55, %v381_v53  ;;  %v275_v62 = vpop.permute.xlu1 %274 }
  0xd4   : > { %v334_v6 = vsub.f32 %v1557_v22, %v275_v62  ;;  %v335_v7 = vsub.f32 %v1559_v23, %v275_v62 }
  0xd5   : > { %vm623_vm2 = vcmp.gt.f32.partialorder %v591_v60, 0.0  ;;  %vm655_vm3 = vcmp.lt.f32.partialorder %v591_v60, 0.5625  ;;  %vm622_vm4 = vcmp.gt.f32.partialorder %v590_v58, 0.0  ;;  %vm654_vm5 = vcmp.lt.f32.partialorder %v590_v58, 0.5625 }
  0xd6   : > { %vm687_vm6 = vmand %vm623_vm2, %vm655_vm3  ;;  %v366_v20 = vmul.f32 %v334_v6, %v334_v6  ;;  %v367_v21 = vmul.f32 %v335_v7, %v335_v7 }
  0xd7   : > { %1153 = vmatprep.mubr.msk.f32.mxu1 %vm687_vm6, %v1343_v13  ;;  %vm686_vm7 = vmand %vm622_vm4, %vm654_vm5 }
  0xd8   : > { %1154 = vmatmul.mubr.msk.f32.gmra.mrb[10].mxu1 %vm686_vm7, %v1343_v13  ;;  %v462_v10 = vpop.permute.xlu1 %461  ;;  %vm675_vm2 = vmand %vm611_vm8, %vm643_vm9 }
  0xd9   : > { %v512_v11 = vsub.f32 %v1549_v16, %v462_v10  ;;  %v513_v12 = vsub.f32 %v1551_v3, %v462_v10  ;;  %vm674_vm5 = vmand %vm610_vm15, %vm642_vm0  ;;  %vm1045_vm0 = vcmask 15360  }
  0xdb   : > { %v544_v24 = vmul.f32 %v512_v11, %v512_v11  ;;  %v545_v19 = vmul.f32 %v513_v12, %v513_v12 }
  0xdc   : > { %v494_v26 = vpop.permute.xlu1 %493 }
  0xdd   : > { %v576_v28 = vadd.f32 %v544_v24, %v366_v20  ;;  %v577_v29 = vadd.f32 %v545_v19, %v367_v21  ;;  %v528_v30 = vsub.f32 %v1549_v16, %v494_v26  ;;  %v529_v31 = vsub.f32 %v1551_v3, %v494_v26 }
  0xdf   : > { %v560_v34 = vmul.f32 %v528_v30, %v528_v30  ;;  %v561_v27 = vmul.f32 %v529_v31, %v529_v31  ;;  %vm609_vm10 = vcmp.gt.f32.partialorder %v577_v29, 0.0  ;;  %vm641_vm11 = vcmp.lt.f32.partialorder %v577_v29, 0.5625 }
  0xe0   : > { %vm673_vm12 = vmand %vm609_vm10, %vm641_vm11  ;;  %vm608_vm13 = vcmp.gt.f32.partialorder %v576_v28, 0.0  ;;  %vm640_vm14 = vcmp.lt.f32.partialorder %v576_v28, 0.5625 }
  0xe1   : > { %v592_v36 = vadd.f32 %v560_v34, %v382_v32  ;;  %v593_v35 = vadd.f32 %v561_v27, %v383_v33  ;;  %1139 = vmatprep.mubr.msk.f32.mxu0 %vm673_vm12, %v1343_v13  ;;  %v320_v37 = vpop.permute.xlu1 %319  ;;  %vm672_vm1 = vmand %vm608_vm13, %vm640_vm14 }
  0xe2   : > { %1140 = vmatmul.mubr.msk.f32.gmra.mrb[12].mxu0 %vm672_vm1, %v1343_v13  ;;  %v352_v38 = vsub.f32 %v1557_v22, %v320_v37  ;;  %v353_v39 = vsub.f32 %v1559_v23, %v320_v37  ;;  %v1344_v23 = vmov 4  }
  0xe3   : > { %1141 = vmatprep.mubr.msk.f32.mxu0 %vm675_vm2, %v1343_v13  ;;  %vm625_vm3 = vcmp.gt.f32.partialorder %v593_v35, 0.0  ;;  %vm657_vm4 = vcmp.lt.f32.partialorder %v593_v35, 0.5625  ;;  %vm624_vm6 = vcmp.gt.f32.partialorder %v592_v36, 0.0  ;;  %vm656_vm7 = vcmp.lt.f32.partialorder %v592_v36, 0.5625  ;;  %1321 = vset.pattern.permute.xlu0 %v1344_v23 }
  0xe4   : > { %vm689_vm10 = vmand %vm625_vm3, %vm657_vm4  ;;  %v384_v43 = vmul.f32 %v352_v38, %v352_v38  ;;  %v385_v44 = vmul.f32 %v353_v39, %v353_v39  ;;  %1320 = vset.pattern.permute.xlu1 %v1344_v23  ;;  %v1323_v23 = vld [vmem:[%s1414_s11] sm:$0xff] }
  0xe5   : > { %1155 = vmatprep.mubr.msk.f32.mxu1 %vm689_vm10, %v1343_v13  ;;  %vm688_vm11 = vmand %vm624_vm6, %vm656_vm7 }
  0xe6   : > { %1142 = vmatmul.mubr.msk.f32.gmra.mrb[14].mxu0 %vm674_vm5, %v1343_v13  ;;  %1156 = vmatmul.mubr.msk.f32.gmra.mrb[12].mxu1 %vm688_vm11, %v1343_v13  ;;  %v498_v40 = vpop.permute.xlu1 %497 }
  0xe7   : > { %v530_v41 = vsub.f32 %v1549_v16, %v498_v40  ;;  %v531_v42 = vsub.f32 %v1551_v3, %v498_v40 }
  0xe9   : > { %v562_v45 = vmul.f32 %v530_v41, %v530_v41  ;;  %v563_v46 = vmul.f32 %v531_v42, %v531_v42 }
  0xeb   : > { %v594_v47 = vadd.f32 %v562_v45, %v384_v43  ;;  %v595_v22 = vadd.f32 %v563_v46, %v385_v44  ;;  %v1322_v43 = vld [vmem:[%s1414_s11 + $0x40] sm:$0xff] }
  0xed   : > { %vm627_vm8 = vcmp.gt.f32.partialorder %v595_v22, 0.0  ;;  %vm659_vm9 = vcmp.lt.f32.partialorder %v595_v22, 0.5625  ;;  %vm626_vm12 = vcmp.gt.f32.partialorder %v594_v47, 0.0  ;;  %vm658_vm13 = vcmp.lt.f32.partialorder %v594_v47, 0.5625 }
  0xee   : > { %vm691_vm14 = vmand %vm627_vm8, %vm659_vm9 }
  0xef   : > { %1157 = vmatprep.mubr.msk.f32.mxu1 %vm691_vm14, %v1343_v13  ;;  %vm690_vm15 = vmand %vm626_vm12, %vm658_vm13 }
  0xf0   : > { %1158 = vmatmul.mubr.msk.f32.gmra.mrb[14].mxu1 %vm690_vm15, %v1343_v13 }
 0x17b   : > { %v1193_v16 = vpop.f32.mrb[0].mxu0 }
 0x17c   : > { %v1194_v3 = vpop.f32.mrb[1].mxu0 }
 0x17d   : > { %v1683_v48 = vadd.f32 %v1194_v3, %v1193_v16 }
 0x17f   : > { %885 = vrot.lane.b32.xlu1 %v1683_v48, %s1345_s13 }
 0x180   : > { %v1217_v49 = vpop.f32.mrb[0].mxu1 }
 0x181   : > { %v1218_v50 = vpop.f32.mrb[1].mxu1 }
 0x182   : > { %v1687_v51 = vadd.f32 %v1218_v50, %v1217_v49 }
 0x184   : > { %v1196_v52 = vpop.f32.mrb[2].mxu0  ;;  %982 = vperm.xlu0 %1321, %v1687_v51   ;;  %901 = vrot.lane.b32.xlu1 %v1687_v51, %s1345_s13  ;;  %v1220_v13 = vpop.f32.mrb[2].mxu1 }
 0x185   : > { %v1197_v53 = vpop.f32.mrb[3].mxu0  ;;  %v1221_v54 = vpop.f32.mrb[3].mxu1 }
 0x186   : > { %v1692_v55 = vadd.f32 %v1197_v53, %v1196_v52  ;;  %v1694_v57 = vadd.f32 %v1221_v54, %v1220_v13  ;;  %v1324_v52 = vld [vmem:[%s1414_s11 + $0x48] sm:$0xff] }
 0x188   : > { %887 = vrot.lane.b32.xlu0 %v1692_v55, %s1345_s13  ;;  %950 = vperm.xlu1 %1320, %v1683_v48   ;;  %v1199_v58 = vpop.f32.mrb[4].mxu0 }
 0x189   : > { %v1200_v60 = vpop.f32.mrb[5].mxu0 }
 0x18a   : > { %v1699_v62 = vadd.f32 %v1200_v60, %v1199_v58  ;;  %v1223_v1 = vpop.f32.mrb[4].mxu1  ;;  %v1325_v60 = vld [vmem:[%s1414_s11 + $0x8] sm:$0xff] }
 0x18b   : > { %v1224_v2 = vpop.f32.mrb[5].mxu1 }
 0x18c   : > { %986 = vperm.xlu1 %1320, %v1694_v57   ;;  %903 = vrot.lane.b32.xlu0 %v1694_v57, %s1345_s13  ;;  %v1202_v4 = vpop.f32.mrb[6].mxu0  ;;  %v1704_v5 = vadd.f32 %v1224_v2, %v1223_v1 }
 0x18d   : > { %v1203_v6 = vpop.f32.mrb[7].mxu0 }
 0x18e   : > { %v1706_v7 = vadd.f32 %v1203_v6, %v1202_v4 }
 0x190   : > { %954 = vperm.xlu0 %1321, %v1692_v55   ;;  %889 = vrot.lane.b32.xlu1 %v1699_v62, %s1345_s13 }
 0x193   : > { %v1226_v8 = vpop.f32.mrb[6].mxu1 }
 0x194   : > { %990 = vperm.xlu0 %1321, %v1704_v5   ;;  %905 = vrot.lane.b32.xlu1 %v1704_v5, %s1345_s13  ;;  %v1227_v9 = vpop.f32.mrb[7].mxu1 }
 0x195   : > { %v1714_v10 = vadd.f32 %v1227_v9, %v1226_v8 }
 0x198   : > { %891 = vrot.lane.b32.xlu0 %v1706_v7, %s1345_s13  ;;  %958 = vperm.xlu1 %1320, %v1699_v62  }
 0x19c   : > { %962 = vperm.xlu1 %1320, %v1706_v7   ;;  %907 = vrot.lane.b32.xlu0 %v1714_v10, %s1345_s13 }
 0x19d   : > { %v1205_v11 = vpop.f32.mrb[8].mxu0 }
 0x19e   : > { %v1206_v12 = vpop.f32.mrb[9].mxu0 }
 0x19f   : > { %v1722_v14 = vadd.f32 %v1206_v12, %v1205_v11 }
 0x1a0   : > { %994 = vperm.xlu1 %1320, %v1714_v10  }
 0x1a1   : > { %v1208_v15 = vpop.f32.mrb[10].mxu0  ;;  %966 = vperm.xlu0 %1321, %v1722_v14   ;;  %v1229_v17 = vpop.f32.mrb[8].mxu1 }
 0x1a2   : > { %v1209_v18 = vpop.f32.mrb[11].mxu0  ;;  %v1230_v21 = vpop.f32.mrb[9].mxu1 }
 0x1a3   : > { %v1726_v20 = vadd.f32 %v1209_v18, %v1208_v15  ;;  %v1730_v24 = vadd.f32 %v1230_v21, %v1229_v17  ;;  %v1326_v15 = vld [vmem:[%s1414_s11 + $0x10] sm:$0xff] }
 0x1a4   : > { %893 = vrot.lane.b32.xlu1 %v1722_v14, %s1345_s13 }
 0x1a5   : > { %998 = vperm.xlu0 %1321, %v1730_v24  }
 0x1a8   : > { %909 = vrot.lane.b32.xlu1 %v1730_v24, %s1345_s13 }
 0x1a9   : > { %895 = vrot.lane.b32.xlu0 %v1726_v20, %s1345_s13 }
 0x1ab   : > { %v1232_v19 = vpop.f32.mrb[10].mxu1 }
 0x1ac   : > { %970 = vperm.xlu1 %1320, %v1726_v20   ;;  %v1233_v25 = vpop.f32.mrb[11].mxu1 }
 0x1ad   : > { %v1738_v26 = vadd.f32 %v1233_v25, %v1232_v19 }
 0x1af   : > { %911 = vrot.lane.b32.xlu0 %v1738_v26, %s1345_s13 }
 0x1b0   : > { %1002 = vperm.xlu1 %1320, %v1738_v26  }
 0x1b5   : > { %v1211_v28 = vpop.f32.mrb[12].mxu0 }
 0x1b6   : > { %v1212_v29 = vpop.f32.mrb[13].mxu0 }
 0x1b7   : > { %v1743_v30 = vadd.f32 %v1212_v29, %v1211_v28 }
 0x1b9   : > { %v1214_v31 = vpop.f32.mrb[14].mxu0  ;;  %974 = vperm.xlu0 %1321, %v1743_v30   ;;  %897 = vrot.lane.b32.xlu1 %v1743_v30, %s1345_s13  ;;  %v1235_v32 = vpop.f32.mrb[12].mxu1 }
 0x1ba   : > { %v1215_v33 = vpop.f32.mrb[15].mxu0  ;;  %v1236_v34 = vpop.f32.mrb[13].mxu1 }
 0x1bb   : > { %v1748_v27 = vadd.f32 %v1215_v33, %v1214_v31  ;;  %v1750_v36 = vadd.f32 %v1236_v34, %v1235_v32 }
 0x1bd   : > { %978 = vperm.xlu1 %1320, %v1748_v27   ;;  %1006 = vperm.xlu0 %1321, %v1750_v36  }
 0x1c1   : > { %899 = vrot.lane.b32.xlu0 %v1748_v27, %s1345_s13 }
 0x1c3   : > { %v1238_v35 = vpop.f32.mrb[14].mxu1 }
 0x1c4   : > { %v1239_v37 = vpop.f32.mrb[15].mxu1 }
 0x1c5   : > { %v1756_v38 = vadd.f32 %v1239_v37, %v1238_v35  ;;  %913 = vrot.lane.b32.xlu0 %v1750_v36, %s1345_s13 }
 0x1c7   : > { %1010 = vperm.xlu1 %1320, %v1756_v38  }
 0x1cb   : > { %915 = vrot.lane.b32.xlu1 %v1756_v38, %s1345_s13 }
 0x1f1   : > { %v886_v39 = vpop.permute.xlu1 %885 }
 0x1f2   : > { %v933_v22 = vadd.f32 %v1683_v48, %v886_v39 }
 0x1f6   : > { %v902_v40 = vpop.permute.xlu1 %901 }
 0x1f7   : > { %v941_v42 = vadd.f32 %v1687_v51, %v902_v40  ;;  %v1328_v40 = vld [vmem:[%s1414_s11 + $0x60] sm:$0xff] }
 0x203   : > { %v983_v41 = vpop.permute.xlu0 %982 }
 0x204   : > { %v1021_v44 = vmul.f32 %v1322_v43, %v983_v41 }
 0x206   : > { %v1037_v45 = vsub.f32 %v941_v42, %v1021_v44 }
 0x207   : > { %v888_v46 = vpop.permute.xlu0 %887  ;;  %v951_v47 = vpop.permute.xlu1 %950 }
 0x208   : > { %1054 = vst.msk [vmem:[%s1770_s17 + $0x40] sm:$0xff] %vm1045_vm0, %v1037_v45  ;;  %v1013_v16 = vmul.f32 %v1323_v23, %v951_v47  ;;  %v934_v48 = vadd.f32 %v1692_v55, %v888_v46  ;;  %v1329_v45 = vld [vmem:[%s1414_s11 + $0x28] sm:$0xff] }
 0x20a   : > { %v1029_v3 = vsub.f32 %v933_v22, %v1013_v16 }
 0x20b   : > { %v904_v49 = vpop.permute.xlu0 %903  ;;  %v987_v50 = vpop.permute.xlu1 %986 }
 0x20c   : > { %1046 = vst.msk [vmem:[%s1770_s17] sm:$0xff] %vm1045_vm0, %v1029_v3  ;;  %v942_v51 = vadd.f32 %v1694_v57, %v904_v49  ;;  %v1022_v13 = vmul.f32 %v1324_v52, %v987_v50 }
 0x20e   : > { %v1038_v53 = vsub.f32 %v942_v51, %v1022_v13 }
 0x20f   : > { %v955_v54 = vpop.permute.xlu0 %954  ;;  %v890_v58 = vpop.permute.xlu1 %889 }
 0x210   : > { %1055 = vst.msk [vmem:[%s1770_s17 + $0x48] sm:$0xff] %vm1045_vm0, %v1038_v53  ;;  %v1014_v1 = vmul.f32 %v1325_v60, %v955_v54  ;;  %v935_v55 = vadd.f32 %v1699_v62, %v890_v58  ;;  %v1331_v60 = vld [vmem:[%s1414_s11 + $0x70] sm:$0xff] }
 0x212   : > { %v1030_v2 = vsub.f32 %v934_v48, %v1014_v1 }
 0x213   : > { %v991_v4 = vpop.permute.xlu0 %990  ;;  %v906_v6 = vpop.permute.xlu1 %905 }
 0x214   : > { %1047 = vst.msk [vmem:[%s1770_s17 + $0x8] sm:$0xff] %vm1045_vm0, %v1030_v2  ;;  %v1023_v57 = vmul.f32 %v991_v4, %v1504_v56  ;;  %v943_v8 = vadd.f32 %v1704_v5, %v906_v6  ;;  %v1327_v5 = vld [vmem:[%s1414_s11 + $0x18] sm:$0xff] }
 0x215   : > { %v1332_v6 = vld [vmem:[%s1414_s11 + $0x78] sm:$0xff] }
 0x216   : > { %v1039_v9 = vsub.f32 %v943_v8, %v1023_v57 }
 0x217   : > { %v892_v11 = vpop.permute.xlu0 %891  ;;  %v959_v12 = vpop.permute.xlu1 %958 }
 0x218   : > { %1056 = vst.msk [vmem:[%s1770_s17 + $0x50] sm:$0xff] %vm1045_vm0, %v1039_v9  ;;  %v1015_v17 = vmul.f32 %v1326_v15, %v959_v12  ;;  %v936_v19 = vadd.f32 %v1706_v7, %v892_v11 }
 0x21a   : > { %v1031_v18 = vsub.f32 %v935_v55, %v1015_v17 }
 0x21b   : > { %v963_v21 = vpop.permute.xlu1 %962  ;;  %v908_v56 = vpop.permute.xlu0 %907 }
 0x21c   : > { %1048 = vst.msk [vmem:[%s1770_s17 + $0x10] sm:$0xff] %vm1045_vm0, %v1031_v18  ;;  %v1016_v25 = vmul.f32 %v1327_v5, %v963_v21  ;;  %v944_v62 = vadd.f32 %v1714_v10, %v908_v56 }
 0x21e   : > { %v1032_v28 = vsub.f32 %v936_v19, %v1016_v25 }
 0x21f   : > { %v995_v29 = vpop.permute.xlu1 %994 }
 0x220   : > { %1049 = vst.msk [vmem:[%s1770_s17 + $0x18] sm:$0xff] %vm1045_vm0, %v1032_v28  ;;  %v1024_v31 = vmul.f32 %v995_v29, %v1512_v59  ;;  %v967_v32 = vpop.permute.xlu0 %966 }
 0x221   : > { %v1017_v7 = vmul.f32 %v967_v32, %v1521_v61 }
 0x222   : > { %v1040_v33 = vsub.f32 %v944_v62, %v1024_v31 }
 0x223   : > { %v894_v34 = vpop.permute.xlu1 %893 }
 0x224   : > { %1057 = vst.msk [vmem:[%s1770_s17 + $0x58] sm:$0xff] %vm1045_vm0, %v1040_v33  ;;  %v937_v35 = vadd.f32 %v1722_v14, %v894_v34  ;;  %v999_v37 = vpop.permute.xlu0 %998 }
 0x225   : > { %v1025_v10 = vmul.f32 %v1328_v40, %v999_v37 }
 0x226   : > { %v1033_v39 = vsub.f32 %v937_v35, %v1017_v7 }
 0x227   : > { %v910_v41 = vpop.permute.xlu1 %909 }
 0x228   : > { %1050 = vst.msk [vmem:[%s1770_s17 + $0x20] sm:$0xff] %vm1045_vm0, %v1033_v39  ;;  %v945_v59 = vadd.f32 %v1730_v24, %v910_v41  ;;  %v896_v42 = vpop.permute.xlu0 %895 }
 0x229   : > { %v938_v61 = vadd.f32 %v1726_v20, %v896_v42 }
 0x22a   : > { %v1041_v43 = vsub.f32 %v945_v59, %v1025_v10 }
 0x22b   : > { %v971_v44 = vpop.permute.xlu1 %970 }
 0x22c   : > { %1058 = vst.msk [vmem:[%s1770_s17 + $0x60] sm:$0xff] %vm1045_vm0, %v1041_v43  ;;  %v1018_v14 = vmul.f32 %v1329_v45, %v971_v44  ;;  %v912_v46 = vpop.permute.xlu0 %911 }
 0x22d   : > { %v946_v23 = vadd.f32 %v1738_v26, %v912_v46 }
 0x22e   : > { %v1034_v47 = vsub.f32 %v938_v61, %v1018_v14 }
 0x22f   : > { %v1003_v22 = vpop.permute.xlu1 %1002 }
 0x230   : > { %1051 = vst.msk [vmem:[%s1770_s17 + $0x28] sm:$0xff] %vm1045_vm0, %v1034_v47  ;;  %v1026_v24 = vmul.f32 %v1003_v22, %v1530_v63  ;;  %v1330_v63 = vld [vmem:[%s1414_s11 + $0x38] sm:$0xff] }
 0x232   : > { %v1042_v16 = vsub.f32 %v946_v23, %v1026_v24 }
 0x233   : > { %v898_v20 = vpop.permute.xlu1 %897 }
 0x234   : > { %1059 = vst.msk [vmem:[%s1770_s17 + $0x68] sm:$0xff] %vm1045_vm0, %v1042_v16  ;;  %v939_v49 = vadd.f32 %v1743_v30, %v898_v20 }
 0x238   : > { %v975_v3 = vpop.permute.xlu0 %974 }
 0x239   : > { %v1019_v50 = vmul.f32 %v975_v3, %v1537_v0 }
 0x23b   : > { %v1035_v51 = vsub.f32 %v939_v49, %v1019_v50 }
 0x23c   : > { %v1007_v52 = vpop.permute.xlu0 %1006  ;;  %v979_v26 = vpop.permute.xlu1 %978 }
 0x23d   : > { %1052 = vst.msk [vmem:[%s1770_s17 + $0x30] sm:$0xff] %vm1045_vm0, %v1035_v51  ;;  %v1020_v53 = vmul.f32 %v1330_v63, %v979_v26  ;;  %v1027_v1 = vmul.f32 %v1331_v60, %v1007_v52 }
 0x240   : > { %v900_v13 = vpop.permute.xlu0 %899 }
 0x241   : > { %v940_v54 = vadd.f32 %v1748_v27, %v900_v13 }
 0x243   : > { %v1036_v58 = vsub.f32 %v940_v54, %v1020_v53 }
 0x244   : > { %v914_v48 = vpop.permute.xlu0 %913 }
 0x245   : > { %1053 = vst.msk [vmem:[%s1770_s17 + $0x38] sm:$0xff] %vm1045_vm0, %v1036_v58  ;;  %v947_v0 = vadd.f32 %v1750_v36, %v914_v48 }
 0x246   : > { %v1011_v30 = vpop.permute.xlu1 %1010 }
 0x247   : > { %v1043_v2 = vsub.f32 %v947_v0, %v1027_v1  ;;  %v1028_v57 = vmul.f32 %v1332_v6, %v1011_v30 }
 0x249   : > { %1060 = vst.msk [vmem:[%s1770_s17 + $0x70] sm:$0xff] %vm1045_vm0, %v1043_v2 }
 0x24a   : > { %v916_v4 = vpop.permute.xlu1 %915 }
 0x24b   : > { %v948_v8 = vadd.f32 %v1756_v38, %v916_v4 }
 0x24d   : > { %v1044_v9 = vsub.f32 %v948_v8, %v1028_v57 }
 0x24f   : > { %1061 = vst.msk [vmem:[%s1770_s17 + $0x78] sm:$0xff] %vm1045_vm0, %v1044_v9 }
 0x250 PF: > { %s13_s12 = sadd.s32 1, %s1339_s12  }
 0x251   : > { %p10_p4 = scmp.ge.s32.totalorder %s13_s12, 4  }
 0x253   :  { %12 = sbr.rel (!%p10_p4) target bundleno = 1 (0x1), region = 62 }

</bundles_post_ra>
